<compile_context>
chip_gen: v5e
topology: v5e:2x2
jax: 0.10.0
libtpu: 0.0.40
codegen_flags: <defaults>
</compile_context>

<pallas_src>
from functools import lru_cache, partial

import numpy as np
import jax
import jax.numpy as jnp
from jax.experimental import pallas as pl
from jax.experimental.pallas import tpu as pltpu


# ----------------------------------------------------------------------------
# Resampling matrices (numpy only; cached per static shape pair).
# Bilinear matches nn.Upsample(mode='bilinear') with align_corners=False.
# ----------------------------------------------------------------------------
def _bilinear_matrix(out_size, in_size):
    o = np.arange(out_size, dtype=np.float64)
    src = np.clip((o + 0.5) * (in_size / out_size) - 0.5, 0.0, in_size - 1)
    i0 = np.floor(src).astype(np.int64)
    i1 = np.minimum(i0 + 1, in_size - 1)
    frac = src - i0
    m = np.zeros((out_size, in_size), dtype=np.float32)
    m[np.arange(out_size), i0] += (1.0 - frac).astype(np.float32)
    m[np.arange(out_size), i1] += frac.astype(np.float32)
    return m


@lru_cache(maxsize=None)
def _bilinear_kron_t(out_hw, in_hw):
    """numpy (H*W, Ho*Wo) matrix K^T so that  upsampled_flat = x_flat @ K^T."""
    (Ho, Wo), (H, W) = out_hw, in_hw
    k = np.kron(_bilinear_matrix(Ho, H), _bilinear_matrix(Wo, W))  # (Ho*Wo, H*W)
    return np.ascontiguousarray(k.T).astype(np.float32)


@lru_cache(maxsize=None)
def _avgpool2_kron_t(in_hw):
    """numpy (H*W, (H/2)*(W/2)) matrix for 2x2 average pooling on flat spatial."""
    H, W = in_hw

    def pool_mat(n):
        m = np.zeros((n // 2, n), np.float32)
        idx = np.arange(n // 2)
        m[idx, 2 * idx] = 0.5
        m[idx, 2 * idx + 1] = 0.5
        return m

    k = np.kron(pool_mat(H), pool_mat(W))                # (H*W/4, H*W)
    return np.ascontiguousarray(k.T).astype(np.float32)  # (H*W, H*W/4)


# ----------------------------------------------------------------------------
# Kernel 1: fused 1x1 conv + bias + ReLU + 2x2 average pool.
#   x viewed as (N, C_in, H*W)  (free reshape of contiguous NCHW)
#   o[n] = relu(W @ x[n] + b) @ PK      PK: (H*W, (H/2)*(W/2)) pooling matrix
# Spatial axis stays on lanes throughout; everything is MXU/VPU work.
# ----------------------------------------------------------------------------
def _conv1x1_relu_pool_kernel(x_ref, w_ref, b_ref, pk_ref, o_ref):
    y = jnp.dot(w_ref[...], x_ref[0], preferred_element_type=jnp.float32)  # (Cout, HW)
    y = jnp.maximum(y + b_ref[...], 0.0)
    p = jnp.dot(y, pk_ref[...], preferred_element_type=jnp.float32)        # (Cout, HW/4)
    o_ref[0] = p.astype(o_ref.dtype)


def conv1x1_relu_pool2(x_nchw, w_oc_ic, b):
    """x: (N, Cin, H, W), w: (Cout, Cin), b: (Cout,) -> (N, Cout, H/2, W/2)."""
    N, C_in, H, W = (int(d) for d in x_nchw.shape)
    C_out = int(w_oc_ic.shape[0])
    HW = H * W
    Hp, Wp = H // 2, W // 2
    xm = x_nchw.reshape(N, C_in, HW)                 # pure view, no HBM re-layout
    pk = jnp.asarray(_avgpool2_kron_t((H, W)))       # compile-time constant
    b2 = b.reshape(C_out, 1)

    out = pl.pallas_call(
        _conv1x1_relu_pool_kernel,
        out_shape=jax.ShapeDtypeStruct((N, C_out, Hp * Wp), jnp.float32),
        grid=(N,),
        in_specs=[
            pl.BlockSpec((1, C_in, HW), lambda n: (n, 0, 0)),
            pl.BlockSpec((C_out, C_in), lambda n: (0, 0)),
            pl.BlockSpec((C_out, 1), lambda n: (0, 0)),
            pl.BlockSpec((HW, Hp * Wp), lambda n: (0, 0)),
        ],
        out_specs=pl.BlockSpec((1, C_out, Hp * Wp), lambda n: (n, 0, 0)),
        compiler_params=pltpu.CompilerParams(
            dimension_semantics=("parallel",)),
    )(xm, w_oc_ic, b2, pk)
    return out.reshape(N, C_out, Hp, Wp)


# ----------------------------------------------------------------------------
# Kernel 2: fused bilinear-upsample-to-target + channel concat (all levels in
# one pallas_call).  Per batch n, each level l does one lane-dense MXU matmul
#   u_l = f_l[n] @ K_l^T          f_l: (C_l, H_l*W_l),  K_l^T: (H_l*W_l, Ho*Wo)
# and writes it to its channel slice of the (1, C_total, Ho*Wo) output block.
# ----------------------------------------------------------------------------
def _upsample_concat_kernel(n_levels, *refs):
    o_ref = refs[-1]
    off = 0
    for l in range(n_levels):
        f = refs[l][0]                        # (C_l, Hl*Wl)
        k = refs[n_levels + l][...]           # (Hl*Wl, Ho*Wo)
        u = jnp.dot(f, k, preferred_element_type=jnp.float32)
        c = f.shape[0]
        o_ref[0, off:off + c, :] = u.astype(o_ref.dtype)
        off += c


def bilinear_upsample_concat(features, target_size):
    """Upsample each NCHW feature to target_size (bilinear, align_corners=False)
    and concat along channels; single fused kernel, output written exactly once."""
    Ho, Wo = int(target_size[0]), int(target_size[1])
    N = int(features[0].shape[0])
    chans = [int(f.shape[1]) for f in features]
    c_total = sum(chans)
    n_levels = len(features)

    flat_feats = [f.reshape(int(f.shape[0]), int(f.shape[1]),
                            int(f.shape[2]) * int(f.shape[3])) for f in features]
    kron_ts = [jnp.asarray(_bilinear_kron_t((Ho, Wo),
                                            (int(f.shape[2]), int(f.shape[3]))))
               for f in features]

    feat_specs = [pl.BlockSpec((1, int(f.shape[1]), int(f.shape[2])),
                               lambda n: (n, 0, 0)) for f in flat_feats]
    kron_specs = [pl.BlockSpec((int(k.shape[0]), int(k.shape[1])),
                               lambda n: (0, 0)) for k in kron_ts]

    out = pl.pallas_call(
        partial(_upsample_concat_kernel, n_levels),
        out_shape=jax.ShapeDtypeStruct((N, c_total, Ho * Wo), jnp.float32),
        grid=(N,),
        in_specs=feat_specs + kron_specs,
        out_specs=pl.BlockSpec((1, c_total, Ho * Wo), lambda n: (n, 0, 0)),
        compiler_params=pltpu.CompilerParams(
            dimension_semantics=("parallel",)),
    )(*flat_feats, *kron_ts)
    return out.reshape(N, c_total, Ho, Wo)


# ----------------------------------------------------------------------------
# Synthetic backbone (2 outblocks at /2 and /4 resolution) + BackboneWrapper.
# The backbone is a stand-in for the arbitrary `backbone` module of the spec.
# ----------------------------------------------------------------------------
def make_params():
    key = jax.random.PRNGKey(42)
    k1, k2, k3, k4 = jax.random.split(key, 4)
    return {
        "w1": 0.1 * jax.random.normal(k1, (8, 4), jnp.float32),    # (C_out, C_in)
        "b1": 0.1 * jax.random.normal(k2, (8,), jnp.float32),
        "w2": 0.1 * jax.random.normal(k3, (16, 8), jnp.float32),
        "b2": 0.1 * jax.random.normal(k4, (16,), jnp.float32),
    }


def backbone(x, params):
    f1 = conv1x1_relu_pool2(x, params["w1"], params["b1"])    # (N,  8, H/2, W/2)
    f2 = conv1x1_relu_pool2(f1, params["w2"], params["b2"])   # (N, 16, H/4, W/4)
    return [f1, f2]                                           # "outblocks" features


@partial(jax.jit, static_argnums=(2,))
def backbone_wrapper_forward(x, params, target_size):
    """Mirrors BackboneWrapper.forward(x) with target_size provided."""
    y = backbone(x, params)
    concat_y = bilinear_upsample_concat(y, target_size)
    return concat_y, y


if __name__ == "__main__":
    key = jax.random.PRNGKey(0)
    x = jax.random.normal(key, (2, 4, 16, 16), jnp.float32)   # NCHW, like PyTorch
    params = make_params()

    concat_y, feats = backbone_wrapper_forward(x, params, (16, 16))
    concat_y = jax.block_until_ready(concat_y)

    assert concat_y.shape == (2, 8 + 16, 16, 16), concat_y.shape
    assert feats[0].shape == (2, 8, 8, 8) and feats[1].shape == (2, 16, 4, 4)

    # Plain-JAX reference (separable bilinear + conv/pool), computed eagerly.
    def ref_conv_pool(xin, w, b):
        y = jnp.einsum("oc,nchw->nohw", w, xin) + b[None, :, None, None]
        y = jnp.maximum(y, 0.0)
        n, c, h, w_ = y.shape
        return y.reshape(n, c, h // 2, 2, w_ // 2, 2).mean(axis=(3, 5))

    r1 = ref_conv_pool(x, params["w1"], params["b1"])
    r2 = ref_conv_pool(r1, params["w2"], params["b2"])

    def ref_upsample(f, target):
        ah = jnp.asarray(_bilinear_matrix(target[0], int(f.shape[2])))
        aw = jnp.asarray(_bilinear_matrix(target[1], int(f.shape[3])))
        return jnp.einsum("oh,nchw,pw->ncop", ah, f, aw)

    ref_cat = jnp.concatenate(
        [ref_upsample(r1, (16, 16)), ref_upsample(r2, (16, 16))], axis=1)

    err_f = max(float(jnp.max(jnp.abs(feats[0] - r1))),
                float(jnp.max(jnp.abs(feats[1] - r2))))
    err_c = float(jnp.max(jnp.abs(concat_y - ref_cat)))
    assert err_f < 1e-4, err_f
    assert err_c < 1e-4, err_c

    print("KERNEL_OK")
</pallas_src>

<mosaic_0001>
module attributes {stable_mosaic.version = 11 : i64} {
  func.func @_conv1x1_relu_pool_kernel(%arg0: i32, %arg1: memref<1x4x256xf32, #tpu.memory_space<vmem>>, %arg2: memref<8x4xf32, #tpu.memory_space<vmem>>, %arg3: memref<8x1xf32, #tpu.memory_space<vmem>>, %arg4: memref<256x64xf32, #tpu.memory_space<vmem>>, %arg5: memref<1x8x64xf32, #tpu.memory_space<vmem>>) attributes {dimension_semantics = [#tpu.dimension_semantics<parallel>], iteration_bounds = array<i64: 2>, scalar_prefetch = 0 : i64, scratch_operands = 0 : i64, tpu.core_type = #tpu.core_type<tc>, window_params = [{transform_indices = @transform_0, window_bounds = array<i64: 1, 4, 256>}, {pipeline_mode = #tpu.pipeline_mode<synchronous>, transform_indices = @transform_1, window_bounds = array<i64: 8, 4>}, {pipeline_mode = #tpu.pipeline_mode<synchronous>, transform_indices = @transform_2, window_bounds = array<i64: 8, 1>}, {pipeline_mode = #tpu.pipeline_mode<synchronous>, transform_indices = @transform_3, window_bounds = array<i64: 256, 64>}, {transform_indices = @transform_4, window_bounds = array<i64: 1, 8, 64>}]} {
    %c0 = arith.constant 0 : index
    %c0_0 = arith.constant 0 : index
    %0 = vector.load %arg2[%c0, %c0_0] : memref<8x4xf32, #tpu.memory_space<vmem>>, vector<8x4xf32>
    %c0_1 = arith.constant 0 : index
    %c0_2 = arith.constant 0 : index
    %c0_3 = arith.constant 0 : index
    %1 = vector.load %arg1[%c0_1, %c0_2, %c0_3] : memref<1x4x256xf32, #tpu.memory_space<vmem>>, vector<1x4x256xf32>
    %2 = vector.shape_cast %1 : vector<1x4x256xf32> to vector<4x256xf32>
    %cst = arith.constant dense<0.000000e+00> : vector<8x256xf32>
    %3 = tpu.matmul %0, %2, %cst {dimension_numbers = #tpu.dot_dimension_numbers<[1], [0], [0], [1], [0, 0, 1, 1], [], []>} : vector<8x4xf32>, vector<4x256xf32>, vector<8x256xf32> -> vector<8x256xf32>
    %c0_4 = arith.constant 0 : index
    %c0_5 = arith.constant 0 : index
    %4 = vector.load %arg3[%c0_4, %c0_5] : memref<8x1xf32, #tpu.memory_space<vmem>>, vector<8x1xf32>
    %5 = vector.broadcast %4 : vector<8x1xf32> to vector<8x256xf32>
    %6 = arith.addf %3, %5 : vector<8x256xf32>
    %cst_6 = arith.constant 0.000000e+00 : f32
    %7 = vector.broadcast %cst_6 : f32 to vector<8x256xf32>
    %8 = arith.maximumf %6, %7 : vector<8x256xf32>
    %c0_7 = arith.constant 0 : index
    %c0_8 = arith.constant 0 : index
    %9 = vector.load %arg4[%c0_7, %c0_8] : memref<256x64xf32, #tpu.memory_space<vmem>>, vector<256x64xf32>
    %cst_9 = arith.constant dense<0.000000e+00> : vector<8x64xf32>
    %10 = tpu.matmul %8, %9, %cst_9 {dimension_numbers = #tpu.dot_dimension_numbers<[1], [0], [0], [1], [0, 0, 1, 1], [], []>} : vector<8x256xf32>, vector<256x64xf32>, vector<8x64xf32> -> vector<8x64xf32>
    %c0_10 = arith.constant 0 : index
    %c0_11 = arith.constant 0 : index
    %c0_12 = arith.constant 0 : index
    %11 = vector.load %arg5[%c0_10, %c0_11, %c0_12] : memref<1x8x64xf32, #tpu.memory_space<vmem>>, vector<1x8x64xf32>
    %12 = vector.shape_cast %11 : vector<1x8x64xf32> to vector<8x64xf32>
    %13 = vector.shape_cast %10 : vector<8x64xf32> to vector<1x8x64xf32>
    tpu.vector_store %arg5[%c0_10, %c0_11, %c0_12], %13 {strides = array<i32>} : memref<1x8x64xf32, #tpu.memory_space<vmem>>, vector<1x8x64xf32>,
    return
  }
  func.func @transform_0(%arg0: i32) -> (i32, i32, i32) {
    %c0_i32 = arith.constant 0 : i32
    %c0_i32_0 = arith.constant 0 : i32
    %c0_i32_1 = arith.constant 0 : i32
    return %arg0, %c0_i32, %c0_i32_0 : i32, i32, i32
  }
  func.func @transform_1(%arg0: i32) -> (i32, i32) {
    %c0_i32 = arith.constant 0 : i32
    %c0_i32_0 = arith.constant 0 : i32
    %c0_i32_1 = arith.constant 0 : i32
    return %c0_i32, %c0_i32_0 : i32, i32
  }
  func.func @transform_2(%arg0: i32) -> (i32, i32) {
    %c0_i32 = arith.constant 0 : i32
    %c0_i32_0 = arith.constant 0 : i32
    %c0_i32_1 = arith.constant 0 : i32
    return %c0_i32, %c0_i32_0 : i32, i32
  }
  func.func @transform_3(%arg0: i32) -> (i32, i32) {
    %c0_i32 = arith.constant 0 : i32
    %c0_i32_0 = arith.constant 0 : i32
    %c0_i32_1 = arith.constant 0 : i32
    return %c0_i32, %c0_i32_0 : i32, i32
  }
  func.func @transform_4(%arg0: i32) -> (i32, i32, i32) {
    %c0_i32 = arith.constant 0 : i32
    %c0_i32_0 = arith.constant 0 : i32
    %c0_i32_1 = arith.constant 0 : i32
    return %arg0, %c0_i32, %c0_i32_0 : i32, i32, i32
  }
}

module attributes {stable_mosaic.version = 11 : i64} {
  func.func @_conv1x1_relu_pool_kernel(%arg0: i32, %arg1: memref<1x8x64xf32, #tpu.memory_space<vmem>>, %arg2: memref<16x8xf32, #tpu.memory_space<vmem>>, %arg3: memref<16x1xf32, #tpu.memory_space<vmem>>, %arg4: memref<64x16xf32, #tpu.memory_space<vmem>>, %arg5: memref<1x16x16xf32, #tpu.memory_space<vmem>>) attributes {dimension_semantics = [#tpu.dimension_semantics<parallel>], iteration_bounds = array<i64: 2>, scalar_prefetch = 0 : i64, scratch_operands = 0 : i64, tpu.core_type = #tpu.core_type<tc>, window_params = [{transform_indices = @transform_0, window_bounds = array<i64: 1, 8, 64>}, {pipeline_mode = #tpu.pipeline_mode<synchronous>, transform_indices = @transform_1, window_bounds = array<i64: 16, 8>}, {pipeline_mode = #tpu.pipeline_mode<synchronous>, transform_indices = @transform_2, window_bounds = array<i64: 16, 1>}, {pipeline_mode = #tpu.pipeline_mode<synchronous>, transform_indices = @transform_3, window_bounds = array<i64: 64, 16>}, {transform_indices = @transform_4, window_bounds = array<i64: 1, 16, 16>}]} {
    %c0 = arith.constant 0 : index
    %c0_0 = arith.constant 0 : index
    %0 = vector.load %arg2[%c0, %c0_0] : memref<16x8xf32, #tpu.memory_space<vmem>>, vector<16x8xf32>
    %c0_1 = arith.constant 0 : index
    %c0_2 = arith.constant 0 : index
    %c0_3 = arith.constant 0 : index
    %1 = vector.load %arg1[%c0_1, %c0_2, %c0_3] : memref<1x8x64xf32, #tpu.memory_space<vmem>>, vector<1x8x64xf32>
    %2 = vector.shape_cast %1 : vector<1x8x64xf32> to vector<8x64xf32>
    %cst = arith.constant dense<0.000000e+00> : vector<16x64xf32>
    %3 = tpu.matmul %0, %2, %cst {dimension_numbers = #tpu.dot_dimension_numbers<[1], [0], [0], [1], [0, 0, 1, 1], [], []>} : vector<16x8xf32>, vector<8x64xf32>, vector<16x64xf32> -> vector<16x64xf32>
    %c0_4 = arith.constant 0 : index
    %c0_5 = arith.constant 0 : index
    %4 = vector.load %arg3[%c0_4, %c0_5] : memref<16x1xf32, #tpu.memory_space<vmem>>, vector<16x1xf32>
    %5 = vector.broadcast %4 : vector<16x1xf32> to vector<16x64xf32>
    %6 = arith.addf %3, %5 : vector<16x64xf32>
    %cst_6 = arith.constant 0.000000e+00 : f32
    %7 = vector.broadcast %cst_6 : f32 to vector<16x64xf32>
    %8 = arith.maximumf %6, %7 : vector<16x64xf32>
    %c0_7 = arith.constant 0 : index
    %c0_8 = arith.constant 0 : index
    %9 = vector.load %arg4[%c0_7, %c0_8] : memref<64x16xf32, #tpu.memory_space<vmem>>, vector<64x16xf32>
    %cst_9 = arith.constant dense<0.000000e+00> : vector<16x16xf32>
    %10 = tpu.matmul %8, %9, %cst_9 {dimension_numbers = #tpu.dot_dimension_numbers<[1], [0], [0], [1], [0, 0, 1, 1], [], []>} : vector<16x64xf32>, vector<64x16xf32>, vector<16x16xf32> -> vector<16x16xf32>
    %c0_10 = arith.constant 0 : index
    %c0_11 = arith.constant 0 : index
    %c0_12 = arith.constant 0 : index
    %11 = vector.load %arg5[%c0_10, %c0_11, %c0_12] : memref<1x16x16xf32, #tpu.memory_space<vmem>>, vector<1x16x16xf32>
    %12 = vector.shape_cast %11 : vector<1x16x16xf32> to vector<16x16xf32>
    %13 = vector.shape_cast %10 : vector<16x16xf32> to vector<1x16x16xf32>
    tpu.vector_store %arg5[%c0_10, %c0_11, %c0_12], %13 {strides = array<i32>} : memref<1x16x16xf32, #tpu.memory_space<vmem>>, vector<1x16x16xf32>,
    return
  }
  func.func @transform_0(%arg0: i32) -> (i32, i32, i32) {
    %c0_i32 = arith.constant 0 : i32
    %c0_i32_0 = arith.constant 0 : i32
    %c0_i32_1 = arith.constant 0 : i32
    return %arg0, %c0_i32, %c0_i32_0 : i32, i32, i32
  }
  func.func @transform_1(%arg0: i32) -> (i32, i32) {
    %c0_i32 = arith.constant 0 : i32
    %c0_i32_0 = arith.constant 0 : i32
    %c0_i32_1 = arith.constant 0 : i32
    return %c0_i32, %c0_i32_0 : i32, i32
  }
  func.func @transform_2(%arg0: i32) -> (i32, i32) {
    %c0_i32 = arith.constant 0 : i32
    %c0_i32_0 = arith.constant 0 : i32
    %c0_i32_1 = arith.constant 0 : i32
    return %c0_i32, %c0_i32_0 : i32, i32
  }
  func.func @transform_3(%arg0: i32) -> (i32, i32) {
    %c0_i32 = arith.constant 0 : i32
    %c0_i32_0 = arith.constant 0 : i32
    %c0_i32_1 = arith.constant 0 : i32
    return %c0_i32, %c0_i32_0 : i32, i32
  }
  func.func @transform_4(%arg0: i32) -> (i32, i32, i32) {
    %c0_i32 = arith.constant 0 : i32
    %c0_i32_0 = arith.constant 0 : i32
    %c0_i32_1 = arith.constant 0 : i32
    return %arg0, %c0_i32, %c0_i32_0 : i32, i32, i32
  }
}

module attributes {stable_mosaic.version = 11 : i64} {
  func.func @_upsample_concat_kernel(%arg0: i32, %arg1: memref<1x8x64xf32, #tpu.memory_space<vmem>>, %arg2: memref<1x16x16xf32, #tpu.memory_space<vmem>>, %arg3: memref<64x256xf32, #tpu.memory_space<vmem>>, %arg4: memref<16x256xf32, #tpu.memory_space<vmem>>, %arg5: memref<1x24x256xf32, #tpu.memory_space<vmem>>) attributes {dimension_semantics = [#tpu.dimension_semantics<parallel>], iteration_bounds = array<i64: 2>, scalar_prefetch = 0 : i64, scratch_operands = 0 : i64, tpu.core_type = #tpu.core_type<tc>, window_params = [{transform_indices = @transform_0, window_bounds = array<i64: 1, 8, 64>}, {transform_indices = @transform_1, window_bounds = array<i64: 1, 16, 16>}, {pipeline_mode = #tpu.pipeline_mode<synchronous>, transform_indices = @transform_2, window_bounds = array<i64: 64, 256>}, {pipeline_mode = #tpu.pipeline_mode<synchronous>, transform_indices = @transform_3, window_bounds = array<i64: 16, 256>}, {transform_indices = @transform_4, window_bounds = array<i64: 1, 24, 256>}]} {
    %c0 = arith.constant 0 : index
    %c0_0 = arith.constant 0 : index
    %c0_1 = arith.constant 0 : index
    %0 = vector.load %arg1[%c0, %c0_0, %c0_1] : memref<1x8x64xf32, #tpu.memory_space<vmem>>, vector<1x8x64xf32>
    %1 = vector.shape_cast %0 : vector<1x8x64xf32> to vector<8x64xf32>
    %c0_2 = arith.constant 0 : index
    %c0_3 = arith.constant 0 : index
    %2 = vector.load %arg3[%c0_2, %c0_3] : memref<64x256xf32, #tpu.memory_space<vmem>>, vector<64x256xf32>
    %cst = arith.constant dense<0.000000e+00> : vector<8x256xf32>
    %3 = tpu.matmul %1, %2, %cst {dimension_numbers = #tpu.dot_dimension_numbers<[1], [0], [0], [1], [0, 0, 1, 1], [], []>} : vector<8x64xf32>, vector<64x256xf32>, vector<8x256xf32> -> vector<8x256xf32>
    %c0_4 = arith.constant 0 : index
    %c0_5 = arith.constant 0 : index
    %c0_6 = arith.constant 0 : index
    %4 = vector.load %arg5[%c0_4, %c0_5, %c0_6] : memref<1x24x256xf32, #tpu.memory_space<vmem>>, vector<1x8x256xf32>
    %5 = vector.shape_cast %4 : vector<1x8x256xf32> to vector<8x256xf32>
    %6 = vector.shape_cast %3 : vector<8x256xf32> to vector<1x8x256xf32>
    tpu.vector_store %arg5[%c0_4, %c0_5, %c0_6], %6 {strides = array<i32>} : memref<1x24x256xf32, #tpu.memory_space<vmem>>, vector<1x8x256xf32>,
    %c0_7 = arith.constant 0 : index
    %c0_8 = arith.constant 0 : index
    %c0_9 = arith.constant 0 : index
    %7 = vector.load %arg2[%c0_7, %c0_8, %c0_9] : memref<1x16x16xf32, #tpu.memory_space<vmem>>, vector<1x16x16xf32>
    %8 = vector.shape_cast %7 : vector<1x16x16xf32> to vector<16x16xf32>
    %c0_10 = arith.constant 0 : index
    %c0_11 = arith.constant 0 : index
    %9 = vector.load %arg4[%c0_10, %c0_11] : memref<16x256xf32, #tpu.memory_space<vmem>>, vector<16x256xf32>
    %cst_12 = arith.constant dense<0.000000e+00> : vector<16x256xf32>
    %10 = tpu.matmul %8, %9, %cst_12 {dimension_numbers = #tpu.dot_dimension_numbers<[1], [0], [0], [1], [0, 0, 1, 1], [], []>} : vector<16x16xf32>, vector<16x256xf32>, vector<16x256xf32> -> vector<16x256xf32>
    %c0_13 = arith.constant 0 : index
    %c8 = arith.constant 8 : index
    %c0_14 = arith.constant 0 : index
    %11 = vector.load %arg5[%c0_13, %c8, %c0_14] : memref<1x24x256xf32, #tpu.memory_space<vmem>>, vector<1x16x256xf32>
    %12 = vector.shape_cast %11 : vector<1x16x256xf32> to vector<16x256xf32>
    %13 = vector.shape_cast %10 : vector<16x256xf32> to vector<1x16x256xf32>
    tpu.vector_store %arg5[%c0_13, %c8, %c0_14], %13 {strides = array<i32>} : memref<1x24x256xf32, #tpu.memory_space<vmem>>, vector<1x16x256xf32>,
    return
  }
  func.func @transform_0(%arg0: i32) -> (i32, i32, i32) {
    %c0_i32 = arith.constant 0 : i32
    %c0_i32_0 = arith.constant 0 : i32
    %c0_i32_1 = arith.constant 0 : i32
    return %arg0, %c0_i32, %c0_i32_0 : i32, i32, i32
  }
  func.func @transform_1(%arg0: i32) -> (i32, i32, i32) {
    %c0_i32 = arith.constant 0 : i32
    %c0_i32_0 = arith.constant 0 : i32
    %c0_i32_1 = arith.constant 0 : i32
    return %arg0, %c0_i32, %c0_i32_0 : i32, i32, i32
  }
  func.func @transform_2(%arg0: i32) -> (i32, i32) {
    %c0_i32 = arith.constant 0 : i32
    %c0_i32_0 = arith.constant 0 : i32
    %c0_i32_1 = arith.constant 0 : i32
    return %c0_i32, %c0_i32_0 : i32, i32
  }
  func.func @transform_3(%arg0: i32) -> (i32, i32) {
    %c0_i32 = arith.constant 0 : i32
    %c0_i32_0 = arith.constant 0 : i32
    %c0_i32_1 = arith.constant 0 : i32
    return %c0_i32, %c0_i32_0 : i32, i32
  }
  func.func @transform_4(%arg0: i32) -> (i32, i32, i32) {
    %c0_i32 = arith.constant 0 : i32
    %c0_i32_0 = arith.constant 0 : i32
    %c0_i32_1 = arith.constant 0 : i32
    return %arg0, %c0_i32, %c0_i32_0 : i32, i32, i32
  }
}

</mosaic_0001>

<bundles_post_ra>
// kernel: backbone_wrapper_forward.3
= control target key start
LH: loop header
LB: loop body
LE: loop exit
PB: predicated region body
PF: predicated region fallthrough
CT: control target
= control target key end

     0   :  { %9 = vsyncpa [#allocation3], 0  ;;  %s526_s15 = smov 0   ;;  %s559_s0 = inlined_call_operand.vmem [shape: f32[2,4,256], index: 0, kind: input, shape index: {}]   ;;  %s560_s1 = inlined_call_operand.vmem [shape: f32[8,4], index: 1, kind: input, shape index: {}]   ;;  %s561_s2 = inlined_call_operand.vmem [shape: f32[8,1], index: 2, kind: input, shape index: {}]   ;;  %s562_s3 = inlined_call_operand.hbm [shape: f32[256,64], index: 3, kind: input, shape index: {}]   ;;  %s563_s4 = inlined_call_operand.vmem [shape: f32[2,8,64], index: 4, kind: output, shape index: {}]  }
   0x1 LB: > { %s152_s18 = sshll.u32 %s562_s3, 4  ;;  %s415_s19 = sadd.s32 4294967295, %s495_s15   ;;  %s495_s15 = sphi %s526_s15, %s15_s15   ;;  %s153_s18 = int_to_ptr.hbm [resolvable:$true] %s152_s18 }
   0x2   : > { %p417_p0 = scmp.ge.s32.totalorder %s495_s15, 1  ;;  %p135_p1 = scmp.lt.s32.totalorder %s495_s15, 3 }
   0x3   : > { %p440_p2 = scmp.eq.s32.totalorder %s415_s19, 0  ;;  %s497_s20 = smov [#allocation2]  }
   0x4   : > { %p136_p3 = pnand %p417_p0, %p135_p1  ;;  %s154_s21 = sshll.u32 %s497_s20, 4  ;;  %s155_s21 = int_to_ptr.vmem [resolvable:$true] %s154_s21 }
   0x5   : > { %s498_s22 = smov 128   ;;  %s499_s23 = smov 8  }
   0x6   : > { %p436_p4 = pneg %p136_p3  ;;  %178 = sbr.rel (%p136_p3) target bundleno = 292 (0x124), region = 36 }
   0x8   : > { %p437_p5 = pnand %p440_p2, %p436_p4 }
   0xa   : > { %439 = dma.hbm_to_vmem [thread:$0]  (!%p437_p5), %s153_s18, 4096, %s155_s21, [#allocation3], %s498_s22, %s498_s22, %s499_s23  }
   0xb   : > { %490 = dma.done.wait (%p440_p2), [#allocation3], 4096  }
   0xc   : > { %492 = vsyncadd (%p440_p2), [#allocation3], 4294963200  ;;  %p204_p6 = scmp.lt.s32.totalorder %s415_s19, 1  ;;  %v500_v0 = vmov 0   ;;  %v215_v2 = vld [vmem:[%s561_s2] sm:$0xff]  ;;  %v290_v5 = vld [vmem:[#allocation2 + $0x70] sm:$0xff] }
   0xd   : > { %454 = vset.pattern.permute.xlu0 %v500_v0  ;;  %v291_v3 = vld [vmem:[#allocation2 + $0x78] sm:$0xff]  ;;  %v306_v6 = vld [vmem:[#allocation2 + $0xf0] sm:$0xff]  ;;  %v289_v7 = vld [vmem:[#allocation2 + $0x68] sm:$0xff]  ;;  %vm229_vm0 = vcmask 1043456   ;;  %vm225_vm1 = vcmask 31744   ;;  %vm348_vm2 = vcmask 523264  }
   0xe   : > { %s565_s19 = smov (!%p204_p6, %s415_s19), 1  ;;  %218 = vperm.xlu0 %454, %v215_v2   ;;  %v307_v4 = vld [vmem:[#allocation2 + $0xf8] sm:$0xff]  ;;  %308 = vmatpush.msra.mxu2 %v291_v3  ;;  %v305_v8 = vld [vmem:[#allocation2 + $0xe8] sm:$0xff]  ;;  %v288_v9 = vld [vmem:[#allocation2 + $0x60] sm:$0xff] }
   0xf   : > { %s431_s24 = sshll.u32 %s565_s19, 3  ;;  %328 = vmatpush.msra.mxu3 %v307_v4  ;;  %v304_v10 = vld [vmem:[#allocation2 + $0xe0] sm:$0xff]  ;;  %v213_v11 = vld [vmem:[%s560_s1] sm:$0xff]  ;;  %v286_v16 = vld [vmem:[#allocation2 + $0x50] sm:$0xff] }
  0x10   : > { %s208_s27 = scalar_lea.vmem %s559_s0, %s431_s24  ;;  %309 = vmatpush.msra.mxu2 %v290_v5  ;;  %v287_v12 = vld [vmem:[#allocation2 + $0x58] sm:$0xff]  ;;  %v302_v17 = vld [vmem:[#allocation2 + $0xd0] sm:$0xff]  ;;  %v285_v18 = vld [vmem:[#allocation2 + $0x48] sm:$0xff]  ;;  %s212_s8 = scalar_lea.vmem %s563_s4, %s431_s24 }
  0x11   : > { %v214_v1 = vld [vmem:[%s208_s27] sm:$0xff]  ;;  %329 = vmatpush.msra.mxu3 %v306_v6  ;;  %v301_v19 = vld [vmem:[#allocation2 + $0xc8] sm:$0xff]  ;;  %v284_v20 = vld [vmem:[#allocation2 + $0x40] sm:$0xff] }
  0x12   : > { %222 = vst [vmem:[#allocation1] ss:$2 sm:$0xff] %v214_v1  ;;  %310 = vmatpush.msra.mxu2 %v289_v7  ;;  %v303_v13 = vld [vmem:[#allocation2 + $0xd8] sm:$0xff]  ;;  %v300_v21 = vld [vmem:[#allocation2 + $0xc0] sm:$0xff]  ;;  %v282_v24 = vld [vmem:[#allocation2 + $0x30] sm:$0xff] }
  0x13   : > { %330 = vmatpush.msra.mxu3 %v305_v8  ;;  %v283_v22 = vld [vmem:[#allocation2 + $0x38] sm:$0xff]  ;;  %v298_v25 = vld [vmem:[#allocation2 + $0xb0] sm:$0xff]  ;;  %v281_v26 = vld [vmem:[#allocation2 + $0x28] sm:$0xff] }
  0x14   : > { %311 = vmatpush.msra.mxu2 %v288_v9  ;;  %v299_v23 = vld [vmem:[#allocation2 + $0xb8] sm:$0xff]  ;;  %v297_v27 = vld [vmem:[#allocation2 + $0xa8] sm:$0xff]  ;;  %v280_v28 = vld [vmem:[#allocation2 + $0x20] sm:$0xff] }
  0x15   : > { %331 = vmatpush.msra.mxu3 %v304_v10  ;;  %v296_v29 = vld [vmem:[#allocation2 + $0xa0] sm:$0xff]  ;;  %v279_v30 = vld [vmem:[#allocation2 + $0x18] sm:$0xff]  ;;  %v278_v32 = vld [vmem:[#allocation2 + $0x10] sm:$0xff] }
  0x16   : > { %312 = vmatpush.msra.mxu2 %v287_v12  ;;  %v295_v31 = vld [vmem:[#allocation2 + $0x98] sm:$0xff]  ;;  %v294_v33 = vld [vmem:[#allocation2 + $0x90] sm:$0xff]  ;;  %v277_v34 = vld [vmem:[#allocation2 + $0x8] sm:$0xff] }
  0x17   : > { %332 = vmatpush.msra.mxu3 %v303_v13  ;;  %v293_v35 = vld [vmem:[#allocation2 + $0x88] sm:$0xff]  ;;  %v276_v36 = vld [vmem:[#allocation2] sm:$0xff] }
  0x18   : > { %313 = vmatpush.msra.mxu2 %v286_v16  ;;  %v292_v37 = vld [vmem:[#allocation2 + $0x80] sm:$0xff] }
  0x19   : > { %v223_v14 = vld.sshfl [vmem:[#allocation1] sm:$0xff pattern:$0x75316420]  ;;  %v224_v15 = vld.sshfl [vmem:[#allocation1 + $0x8] sm:$0xff pattern:$0x75316420]  ;;  %333 = vmatpush.msra.mxu3 %v302_v17 }
  0x1a   : > { %425 = vmatpush.msk.msra.mxu0 %vm229_vm0, %v223_v14  ;;  %427 = vmatpush.msk.msra.mxu1 %vm229_vm0, %v224_v15 }
  0x1b   : > { %426 = vmatmul.msk.f32.vlgmr.msra.gmra.mxu0 %vm225_vm1, %v213_v11  ;;  %428 = vmatmul.msk.f32.vlgmr.msra.gmra.mxu1 %vm225_vm1, %v213_v11 }
  0x1c   : > { %314 = vmatpush.msra.mxu2 %v285_v18  ;;  %334 = vmatpush.msra.mxu3 %v301_v19 }
  0x1e   : > { %315 = vmatpush.msra.mxu2 %v284_v20  ;;  %335 = vmatpush.msra.mxu3 %v300_v21 }
  0x20   : > { %316 = vmatpush.msra.mxu2 %v283_v22  ;;  %336 = vmatpush.msra.mxu3 %v299_v23 }
  0x22   : > { %317 = vmatpush.msra.mxu2 %v282_v24  ;;  %337 = vmatpush.msra.mxu3 %v298_v25 }
  0x24   : > { %318 = vmatpush.msra.mxu2 %v281_v26  ;;  %338 = vmatpush.msra.mxu3 %v297_v27 }
  0x26   : > { %319 = vmatpush.msra.mxu2 %v280_v28  ;;  %339 = vmatpush.msra.mxu3 %v296_v29 }
  0x28   : > { %320 = vmatpush.msra.mxu2 %v279_v30  ;;  %340 = vmatpush.msra.mxu3 %v295_v31 }
  0x2a   : > { %321 = vmatpush.msra.mxu2 %v278_v32  ;;  %341 = vmatpush.msra.mxu3 %v294_v33 }
  0x2c   : > { %322 = vmatpush.msra.mxu2 %v277_v34  ;;  %342 = vmatpush.msra.mxu3 %v293_v35 }
  0x2e   : > { %323 = vmatpush.msra.mxu2 %v276_v36  ;;  %343 = vmatpush.msra.mxu3 %v292_v37 }
  0x80   : > { %v219_v38 = vpop.permute.xlu0 %218 }
  0x98   : > { %v251_v39 = vpop.f32.mrf.mxu0  ;;  %v271_v40 = vpop.f32.mrf.mxu1 }
  0x99   : > { %v252_v41 = vadd.f32 %v251_v39, %v219_v38  ;;  %v272_v42 = vadd.f32 %v271_v40, %v219_v38 }
  0x9b   : > { %v274_v43 = vmax.f32 %v252_v41, 0.0  ;;  %v275_v44 = vmax.f32 %v272_v42, 0.0 }
  0x9d   : > { %324 = vmatmul.f32.vlgmr.msra.gmra.mxu2 %v274_v43  ;;  %344 = vmatmul.f32.vlgmr.msra.gmra.mxu3 %v275_v44 }
 0x120   : > { %v325_v45 = vpop.f32.mrf.mxu2  ;;  %v345_v46 = vpop.f32.mrf.mxu3 }
 0x121   : > { %v346_v47 = vadd.f32 %v345_v46, %v325_v45 }
 0x123   : > { %349 = vst.msk [vmem:[%s212_s8] sm:$0xff] %vm348_vm2, %v346_v47 }
 0x124 PF: > { %s15_s15 = sadd.s32 1, %s495_s15  }
 0x125   : > { %p12_p7 = scmp.ge.s32.totalorder %s15_s15, 4  }
 0x127   :  { %14 = sbr.rel (!%p12_p7) target bundleno = 1 (0x1), region = 71 }
 0x12c   :  { %369 = vsyncpa [#allocation3], 1 }
 0x12d   :  { %371 = vsyncpa [#allocation3 + $0x1], 1 }

// kernel: backbone_wrapper_forward.4
= control target key start
LH: loop header
LB: loop body
LE: loop exit
PB: predicated region body
PF: predicated region fallthrough
CT: control target
= control target key end

     0   :  { %9 = vsyncpa [#allocation3], 0  ;;  %s486_s15 = smov 0   ;;  %s524_s0 = inlined_call_operand.vmem [shape: f32[2,8,64], index: 0, kind: input, shape index: {}]   ;;  %s525_s1 = inlined_call_operand.vmem [shape: f32[16,8], index: 1, kind: input, shape index: {}]   ;;  %s526_s2 = inlined_call_operand.vmem [shape: f32[16,1], index: 2, kind: input, shape index: {}]   ;;  %s527_s3 = inlined_call_operand.hbm [shape: f32[64,16], index: 3, kind: input, shape index: {}]   ;;  %s528_s4 = inlined_call_operand.vmem [shape: f32[2,16,16], index: 4, kind: output, shape index: {}]  }
   0x1 LB: > { %s152_s18 = sshll.u32 %s527_s3, 4  ;;  %s367_s19 = sadd.s32 4294967295, %s455_s15   ;;  %s455_s15 = sphi %s486_s15, %s15_s15   ;;  %s153_s18 = int_to_ptr.hbm [resolvable:$true] %s152_s18 }
   0x2   : > { %p369_p0 = scmp.ge.s32.totalorder %s455_s15, 1  ;;  %p135_p1 = scmp.lt.s32.totalorder %s455_s15, 3 }
   0x3   : > { %p400_p2 = scmp.eq.s32.totalorder %s367_s19, 0  ;;  %s457_s20 = smov [#allocation2]  }
   0x4   : > { %p136_p3 = pnand %p369_p0, %p135_p1  ;;  %s154_s21 = sshll.u32 %s457_s20, 4  ;;  %s155_s21 = int_to_ptr.vmem [resolvable:$true] %s154_s21 }
   0x5   : > { %s458_s22 = smov 128   ;;  %s459_s23 = smov 8  }
   0x6   : > { %p396_p4 = pneg %p136_p3  ;;  %177 = sbr.rel (%p136_p3) target bundleno = 290 (0x122), region = 36 }
   0x8   : > { %p397_p5 = pnand %p400_p2, %p396_p4 }
   0xa   : > { %399 = dma.hbm_to_vmem [thread:$0]  (!%p397_p5), %s153_s18, 1024, %s155_s21, [#allocation3], %s458_s22, %s458_s22, %s459_s23  }
   0xb   : > { %450 = dma.done.wait (%p400_p2), [#allocation3], 1024  }
   0xc   : > { %452 = vsyncadd (%p400_p2), [#allocation3], 4294966272  ;;  %p203_p6 = scmp.lt.s32.totalorder %s367_s19, 1  ;;  %v460_v0 = vmov 0   ;;  %vm227_vm0 = vcmask 64512   ;;  %v212_v2 = vld [vmem:[%s525_s1] sm:$0xff] }
   0xd   : > { %414 = vset.pattern.permute.xlu0 %v460_v0  ;;  %v216_v3 = vld [vmem:[%s526_s2 + $0x8] sm:$0xff]  ;;  %v266_v4 = vld [vmem:[#allocation2 + $0x38] sm:$0xff]  ;;  %v265_v5 = vld [vmem:[#allocation2 + $0x30] sm:$0xff]  ;;  %vm267_vm1 = vcmask 523264   ;;  %vm297_vm2 = vcmask 130048  }
   0xe   : > { %s530_s19 = smov (!%p203_p6, %s367_s19), 1  ;;  %224 = vperm.xlu0 %414, %v216_v3   ;;  %282 = vmatpush.msra.mxu1 %v266_v4  ;;  %v215_v6 = vld [vmem:[%s526_s2] sm:$0xff]  ;;  %v213_v7 = vld [vmem:[%s525_s1 + $0x8] sm:$0xff]  ;;  %v262_v10 = vld [vmem:[#allocation2 + $0x18] sm:$0xff] }
   0xf   : > { %s374_s24 = sshll.u32 %s530_s19, 3  ;;  %384 = vmatpush.msra.mxu2 %v266_v4  ;;  %v264_v8 = vld [vmem:[#allocation2 + $0x28] sm:$0xff]  ;;  %v263_v9 = vld [vmem:[#allocation2 + $0x20] sm:$0xff]  ;;  %v261_v11 = vld [vmem:[#allocation2 + $0x10] sm:$0xff]  ;;  %s383_s10 = sshll.u32 %s530_s19, 4 }
  0x10   : > { %s206_s27 = scalar_lea.vmem %s524_s0, %s374_s24  ;;  %283 = vmatpush.msra.mxu1 %v265_v5  ;;  %v260_v12 = vld [vmem:[#allocation2 + $0x8] sm:$0xff]  ;;  %v259_v13 = vld [vmem:[#allocation2] sm:$0xff]  ;;  %s211_s13 = scalar_lea.vmem %s528_s4, %s383_s10 }
  0x11   : > { %v214_v1 = vld [vmem:[%s206_s27] sm:$0xff]  ;;  %385 = vmatpush.msra.mxu2 %v265_v5 }
  0x12   : > { %249 = vmatpush.msra.mxu0 %v214_v1  ;;  %284 = vmatpush.msra.mxu1 %v264_v8 }
  0x13   : > { %377 = vmatmul.msk.f32.vlgmr.msra.gmra.mxu0 %vm227_vm0, %v212_v2  ;;  %386 = vmatpush.msra.mxu2 %v264_v8 }
  0x14   : > { %285 = vmatpush.msra.mxu1 %v263_v9 }
  0x15   : > { %387 = vmatpush.msra.mxu2 %v263_v9 }
  0x16   : > { %219 = vperm.xlu0 %414, %v215_v6   ;;  %286 = vmatpush.msra.mxu1 %v262_v10 }
  0x17   : > { %388 = vmatpush.msra.mxu2 %v262_v10 }
  0x18   : > { %287 = vmatpush.msra.mxu1 %v261_v11 }
  0x19   : > { %389 = vmatpush.msra.mxu2 %v261_v11 }
  0x1a   : > { %288 = vmatpush.msra.mxu1 %v260_v12 }
  0x1b   : > { %378 = vmatmul.msk.f32.gmra.mxu0 %vm227_vm0, %v213_v7  ;;  %390 = vmatpush.msra.mxu2 %v260_v12 }
  0x1c   : > { %289 = vmatpush.msra.mxu1 %v259_v13 }
  0x1d   : > { %391 = vmatpush.msra.mxu2 %v259_v13 }
  0x80   : > { %v225_v14 = vpop.permute.xlu0 %224 }
  0x88   : > { %v220_v15 = vpop.permute.xlu0 %219 }
  0x90   : > { %v251_v16 = vpop.f32.mrf.mxu0 }
  0x91   : > { %v252_v17 = vadd.f32 %v251_v16, %v220_v15 }
  0x93   : > { %v257_v18 = vmax.f32 %v252_v17, 0.0 }
  0x95   : > { %379 = vmatmul.msk.f32.vlgmr.msra.gmra.mxu1 %vm267_vm1, %v257_v18 }
  0x98   : > { %v254_v19 = vpop.f32.mrf.mxu0 }
  0x99   : > { %v255_v20 = vadd.f32 %v254_v19, %v225_v14 }
  0x9b   : > { %v258_v21 = vmax.f32 %v255_v20, 0.0 }
  0x9d   : > { %380 = vmatmul.msk.f32.vlgmr.msra.gmra.mxu2 %vm267_vm1, %v258_v21 }
 0x112   : > { %v291_v22 = vpop.f32.mrf.mxu1 }
 0x113   : > { %298 = vst.msk [vmem:[%s211_s13] sm:$0xff] %vm297_vm2, %v291_v22 }
 0x120   : > { %v294_v23 = vpop.f32.mrf.mxu2 }
 0x121   : > { %299 = vst.msk [vmem:[%s211_s13 + $0x8] sm:$0xff] %vm297_vm2, %v294_v23 }
 0x122 PF: > { %s15_s15 = sadd.s32 1, %s455_s15  }
 0x123   : > { %p12_p7 = scmp.ge.s32.totalorder %s15_s15, 4  }
 0x125   :  { %14 = sbr.rel (!%p12_p7) target bundleno = 1 (0x1), region = 71 }
 0x12a   :  { %321 = vsyncpa [#allocation3], 1 }
 0x12b   :  { %323 = vsyncpa [#allocation3 + $0x1], 1 }

// kernel: backbone_wrapper_forward.5
= control target key start
LH: loop header
LB: loop body
LE: loop exit
PB: predicated region body
PF: predicated region fallthrough
CT: control target
= control target key end

     0   :  { %s468_s15 = smov 0   ;;  %s557_s0 = inlined_call_operand.vmem [shape: f32[2,8,64], index: 0, kind: input, shape index: {}]   ;;  %s558_s1 = inlined_call_operand.vmem [shape: f32[2,16,16], index: 1, kind: input, shape index: {}]   ;;  %s559_s2 = inlined_call_operand.vmem [shape: f32[64,256], index: 2, kind: input, shape index: {}]   ;;  %s560_s3 = inlined_call_operand.vmem [shape: f32[16,256], index: 3, kind: input, shape index: {}]   ;;  %s561_s4 = inlined_call_operand.vmem [shape: f32[2,24,256], index: 4, kind: output, shape index: {}]  }
   0x1 LB: > { %s408_s16 = sadd.s32 4294967295, %s441_s15   ;;  %p412_p0 = scmp.ge.s32.totalorder %s441_s15, 1  ;;  %s441_s15 = sphi %s468_s15, %s14_s15  }
   0x2   : > { %p171_p1 = scmp.lt.s32.totalorder %s441_s15, 3 }
   0x4   : > { %p172_p2 = pnand %p412_p0, %p171_p1 }
   0x5   : > { %p201_p3 = scmp.lt.s32.totalorder (!%p172_p2), %s408_s16, 1 }
   0x6   : > { %175 = sbr.rel (%p172_p2) target bundleno = 158 (0x9e), region = 36 }
   0xb   : > { %v282_v0 = vld [vmem:[%s560_s3 + $0x10] sm:$0xff]  ;;  %v283_v1 = vld [vmem:[%s560_s3 + $0x18] sm:$0xff]  ;;  %v280_v4 = vld [vmem:[%s560_s3] sm:$0xff]  ;;  %s563_s16 = smov (!%p201_p3, %s408_s16), 1  ;;  %vm284_vm0 = vcmask 130048   ;;  %vm232_vm1 = vcmask 523264  }
   0xc   : > { %v230_v2 = vld [vmem:[%s559_s2 + $0x70] sm:$0xff]  ;;  %305 = vmatpush.msra.mxu2 %v282_v0  ;;  %328 = vmatpush.msra.mxu3 %v283_v1  ;;  %v231_v3 = vld [vmem:[%s559_s2 + $0x78] sm:$0xff]  ;;  %v281_v5 = vld [vmem:[%s560_s3 + $0x8] sm:$0xff]  ;;  %s425_s11 = sshll.u32 %s563_s16, 4  ;;  %s413_s25 = sshll.u32 %s563_s16, 3 }
   0xd   : > { %244 = vmatpush.msra.mxu0 %v230_v2  ;;  %264 = vmatpush.msra.mxu1 %v231_v3  ;;  %v228_v6 = vld [vmem:[%s559_s2 + $0x60] sm:$0xff]  ;;  %v229_v7 = vld [vmem:[%s559_s2 + $0x68] sm:$0xff]  ;;  %v226_v8 = vld [vmem:[%s559_s2 + $0x50] sm:$0xff]  ;;  %s209_s14 = scalar_lea.vmem %s558_s1, %s425_s11  ;;  %s204_s10 = scalar_lea.vmem %s557_s0, %s413_s25 }
   0xe   : > { %306 = vmatpush.msra.mxu2 %v280_v4  ;;  %329 = vmatpush.msra.mxu3 %v281_v5  ;;  %v227_v9 = vld [vmem:[%s559_s2 + $0x58] sm:$0xff]  ;;  %v224_v10 = vld [vmem:[%s559_s2 + $0x40] sm:$0xff]  ;;  %v225_v11 = vld [vmem:[%s559_s2 + $0x48] sm:$0xff] }
   0xf   : > { %245 = vmatpush.msra.mxu0 %v228_v6  ;;  %265 = vmatpush.msra.mxu1 %v229_v7  ;;  %v278_v12 = vld [vmem:[%s209_s14] sm:$0xff]  ;;  %v222_v13 = vld [vmem:[%s559_s2 + $0x30] sm:$0xff]  ;;  %v223_v14 = vld [vmem:[%s559_s2 + $0x38] sm:$0xff] }
  0x10   : > { %419 = vmatmul.msk.f32.vlgmr.msra.gmra.mxu2 %vm284_vm0, %v278_v12  ;;  %421 = vmatmul.msk.f32.vlgmr.msra.gmra.mxu3 %vm284_vm0, %v278_v12  ;;  %v220_v15 = vld [vmem:[%s559_s2 + $0x20] sm:$0xff]  ;;  %v221_v16 = vld [vmem:[%s559_s2 + $0x28] sm:$0xff]  ;;  %v218_v17 = vld [vmem:[%s559_s2 + $0x10] sm:$0xff] }
  0x11   : > { %246 = vmatpush.msra.mxu0 %v226_v8  ;;  %266 = vmatpush.msra.mxu1 %v227_v9  ;;  %v219_v18 = vld [vmem:[%s559_s2 + $0x18] sm:$0xff]  ;;  %v279_v19 = vld [vmem:[%s209_s14 + $0x8] sm:$0xff]  ;;  %v216_v20 = vld [vmem:[%s559_s2] sm:$0xff]  ;;  %s426_s14 = smul.u32 48, %s563_s16 }
  0x12   : > { %v217_v21 = vld [vmem:[%s559_s2 + $0x8] sm:$0xff]  ;;  %v215_v22 = vld [vmem:[%s204_s10] sm:$0xff] }
  0x13   : > { %247 = vmatpush.msra.mxu0 %v224_v10  ;;  %267 = vmatpush.msra.mxu1 %v225_v11  ;;  %s214_s20 = scalar_lea.vmem %s561_s4, %s426_s14 }
  0x15   : > { %248 = vmatpush.msra.mxu0 %v222_v13  ;;  %268 = vmatpush.msra.mxu1 %v223_v14 }
  0x17   : > { %249 = vmatpush.msra.mxu0 %v220_v15  ;;  %269 = vmatpush.msra.mxu1 %v221_v16 }
  0x18   : > { %420 = vmatmul.msk.f32.gmra.mxu2 %vm284_vm0, %v279_v19  ;;  %422 = vmatmul.msk.f32.gmra.mxu3 %vm284_vm0, %v279_v19 }
  0x19   : > { %250 = vmatpush.msra.mxu0 %v218_v17  ;;  %270 = vmatpush.msra.mxu1 %v219_v18 }
  0x1b   : > { %251 = vmatpush.msra.mxu0 %v216_v20  ;;  %271 = vmatpush.msra.mxu1 %v217_v21 }
  0x1c   : > { %417 = vmatmul.msk.f32.vlgmr.msra.gmra.mxu0 %vm232_vm1, %v215_v22  ;;  %418 = vmatmul.msk.f32.vlgmr.msra.gmra.mxu1 %vm232_vm1, %v215_v22 }
  0x93   : > { %v308_v23 = vpop.f32.mrf.mxu2  ;;  %v331_v24 = vpop.f32.mrf.mxu3 }
  0x94   : > { %337 = vst [vmem:[%s214_s20 + $0x10] sm:$0xff] %v308_v23 }
  0x95   : > { %338 = vst [vmem:[%s214_s20 + $0x18] sm:$0xff] %v331_v24 }
  0x99   : > { %v253_v25 = vpop.f32.mrf.mxu0  ;;  %v273_v26 = vpop.f32.mrf.mxu1 }
  0x9a   : > { %276 = vst [vmem:[%s214_s20] sm:$0xff] %v253_v25 }
  0x9b   : > { %277 = vst [vmem:[%s214_s20 + $0x8] sm:$0xff] %v273_v26  ;;  %v311_v27 = vpop.f32.mrf.mxu2  ;;  %v334_v28 = vpop.f32.mrf.mxu3 }
  0x9c   : > { %339 = vst [vmem:[%s214_s20 + $0x20] sm:$0xff] %v311_v27 }
  0x9d   : > { %340 = vst [vmem:[%s214_s20 + $0x28] sm:$0xff] %v334_v28 }
  0x9e PF: > { %s14_s15 = sadd.s32 1, %s441_s15  }
  0x9f   : > { %p11_p4 = scmp.ge.s32.totalorder %s14_s15, 4  }
  0xa1   :  { %13 = sbr.rel (!%p11_p4) target bundleno = 1 (0x1), region = 69 }

</bundles_post_ra>
